<compile_context>
chip_gen: v5e
topology: v5e:2x2
jax: 0.10.0
libtpu: 0.0.40
codegen_flags: <defaults>
</compile_context>

<pallas_src>
import jax
import jax.numpy as jnp
from jax import lax
from jax.experimental import pallas as pl
from jax.experimental.pallas import tpu as pltpu

# ---- static problem shapes (synthetic stand-in for the opaque Keras checkpoint) ----
B, C_IN, T = 2, 4, 16
K = 3                      # Conv1D kernel width (SAME padding)
PAD = K // 2
H = 32                     # Conv1D filters / hidden size
NC = 8                     # output classes (final Dense, linear activation)
NC_PAD = 128               # lane-padded class dim -> lane-dense output store
BT = B * T
KC1 = K * C_IN + 1         # im2col rows incl. conv-bias ones row
H1 = H + 1                 # hidden + dense-bias row
B_PAD = 8                  # sublane-padded batch dim for a full (8,128) store

# packed-constants slab row layout (lanes = NC_PAD = 128)
WC_ROW = 0                               # H rows   : conv weights (+bias col), lanes 0..KC1-1
WD_ROW = H                               # H1 rows  : dense weights (+bias row), lanes 0..NC-1
POOL_ROW = ((WD_ROW + H1 + 7) // 8) * 8  # B_PAD rows: pooling selector (1/T), lanes 0..BT-1
MASK_ROW = POOL_ROW + B_PAD              # K rows   : SAME/batch-boundary masks, lanes 0..BT-1
SLAB_ROWS = ((MASK_ROW + K + 7) // 8) * 8


def keras_model_kernel(x_ref, slab_ref, out_ref):
    # x_ref   : (C_IN, B*T)        lane-dense channels-first input
    # slab_ref: (SLAB_ROWS, 128)   packed constants (see layout above)
    # out_ref : (B_PAD, NC_PAD)    lane/sublane-dense logits slab
    x = x_ref[...]                                                  # single hoisted load

    # --- value-level im2col: SAME padding + batch-boundary masks, no VMEM scratch ---
    rows = []
    for k in range(K):                                              # fully unrolled
        off = k - PAD
        if off == 0:
            rows.append(x)
        else:
            if off > 0:
                shifted = jnp.concatenate(
                    [x[:, off:], jnp.zeros((C_IN, off), jnp.float32)], axis=1)
            else:
                shifted = jnp.concatenate(
                    [jnp.zeros((C_IN, -off), jnp.float32), x[:, :off]], axis=1)
            mask = slab_ref[MASK_ROW + k:MASK_ROW + k + 1, 0:BT]    # (1, BT) precomputed
            rows.append(shifted * mask)
    rows.append(jnp.ones((1, BT), jnp.float32))                     # conv-bias ones row
    p2 = jnp.concatenate(rows, axis=0)                              # (KC1, BT)

    # --- Conv1D(SAME) + bias folded into ONE MXU matmul over all batches, ReLU on VPU ---
    wc = slab_ref[WC_ROW:WC_ROW + H, 0:KC1]                         # (H, KC1)
    h = jnp.maximum(jnp.dot(wc, p2, preferred_element_type=jnp.float32), 0.0)  # (H, BT)

    # --- GlobalAveragePooling1D as a matmul against the precomputed 1/T selector; the
    #     appended ones row makes the pooled last column exactly 1 -> dense bias fold ---
    h_aug = jnp.concatenate([h, jnp.ones((1, BT), jnp.float32)], axis=0)       # (H1, BT)
    pool = slab_ref[POOL_ROW:POOL_ROW + B_PAD, 0:BT]                # (B_PAD, BT)
    pooled = lax.dot_general(pool, h_aug, (((1,), (1,)), ((), ())),
                             preferred_element_type=jnp.float32)    # (B_PAD, H1)

    # --- final Dense (linear) + bias in one matmul, single full unmasked store ---
    wd = slab_ref[WD_ROW:WD_ROW + H1, :]                            # (H1, NC_PAD)
    out_ref[...] = jnp.dot(pooled, wd, preferred_element_type=jnp.float32)


def pack_params(w_conv, b_conv, w_dense, b_dense):
    """One-time host-side layout of all constants into a single lane-aligned slab."""
    wc_aug = jnp.concatenate(                                       # (H, KC1) k-major/c-minor
        [w_conv.reshape(K * C_IN, H).T, b_conv.reshape(H, 1)], axis=1).astype(jnp.float32)
    wd_aug = jnp.concatenate(                                       # (H1, NC) last row = bias
        [w_dense, b_dense.reshape(1, NC)], axis=0).astype(jnp.float32)

    pos = jnp.arange(BT) % T                                        # position within batch
    masks = jnp.stack(
        [((pos + (k - PAD) >= 0) & (pos + (k - PAD) < T)).astype(jnp.float32)
         for k in range(K)], axis=0)                                # (K, BT)

    batch_of_col = jnp.arange(BT) // T
    pool = (batch_of_col[None, :] ==
            jnp.arange(B_PAD)[:, None]).astype(jnp.float32) / T     # (B_PAD, BT), rows>=B zero

    slab = jnp.zeros((SLAB_ROWS, NC_PAD), jnp.float32)
    slab = slab.at[WC_ROW:WC_ROW + H, 0:KC1].set(wc_aug)
    slab = slab.at[WD_ROW:WD_ROW + H1, 0:NC].set(wd_aug)
    slab = slab.at[POOL_ROW:POOL_ROW + B_PAD, 0:BT].set(pool)
    slab = slab.at[MASK_ROW:MASK_ROW + K, 0:BT].set(masks)
    return slab


@jax.jit
def pretrained_keras_model_forward(x, slab):
    """x: (B, C_IN, T) float32 (torch layout); slab: packed constants from pack_params."""
    # tiny lane-dense relayout (512 B), fused by XLA; replaces in-kernel sub-lane extracts
    x2 = jnp.transpose(x, (1, 0, 2)).reshape(C_IN, BT).astype(jnp.float32)

    flops = 2 * (H * KC1 * BT + B_PAD * BT * H1 + B_PAD * H1 * NC_PAD)
    bytes_accessed = 4 * (C_IN * BT + SLAB_ROWS * NC_PAD + B_PAD * NC_PAD)

    vmem = pl.BlockSpec(memory_space=pltpu.MemorySpace.VMEM)        # whole arrays in VMEM
    out_pad = pl.pallas_call(
        keras_model_kernel,
        out_shape=jax.ShapeDtypeStruct((B_PAD, NC_PAD), jnp.float32),
        in_specs=[vmem, vmem],
        out_specs=vmem,
        cost_estimate=pl.CostEstimate(flops=flops, transcendentals=0,
                                      bytes_accessed=bytes_accessed),
    )(x2, slab)
    return out_pad[:B, :NC]                                         # (B, NC) logits


def _reference_forward(x, w_conv, b_conv, w_dense, b_dense):
    """Pure-JAX reference for correctness checking."""
    x_cl = jnp.transpose(x, (0, 2, 1)).astype(jnp.float32)          # (B, T, C)
    x_pad = jnp.pad(x_cl, ((0, 0), (PAD, PAD), (0, 0)))
    acc = jnp.zeros((B, T, H), jnp.float32)
    for k in range(K):
        acc = acc + jnp.einsum("btc,ch->bth", x_pad[:, k:k + T, :], w_conv[k])
    h = jnp.maximum(acc + b_conv[None, :, :], 0.0)
    pooled = jnp.mean(h, axis=1)                                    # (B, H)
    return pooled @ w_dense + b_dense                               # (B, NC)


if __name__ == "__main__":
    key = jax.random.PRNGKey(0)
    kx, kwc, kbc, kwd, kbd = jax.random.split(key, 5)

    # Deterministic synthetic inputs / parameters.
    x = jax.random.normal(kx, (B, C_IN, T), dtype=jnp.float32)
    w_conv = 0.1 * jax.random.normal(kwc, (K, C_IN, H), dtype=jnp.float32)
    b_conv = 0.1 * jax.random.normal(kbc, (1, H), dtype=jnp.float32)
    w_dense = 0.1 * jax.random.normal(kwd, (H, NC), dtype=jnp.float32)
    b_dense = 0.1 * jax.random.normal(kbd, (1, NC), dtype=jnp.float32)

    # One-time weight packing, hoisted OUT of the jitted forward.
    slab = jax.block_until_ready(pack_params(w_conv, b_conv, w_dense, b_dense))

    logits = jax.block_until_ready(pretrained_keras_model_forward(x, slab))

    ref = _reference_forward(x, w_conv, b_conv, w_dense, b_dense)
    assert logits.shape == (B, NC) and logits.dtype == jnp.float32
    assert jnp.allclose(logits, ref, atol=1e-4, rtol=1e-4), "mismatch vs reference"

    print("KERNEL_OK")
</pallas_src>

<mosaic_0001>
module attributes {stable_mosaic.version = 11 : i64} {
  func.func @keras_model_kernel(%arg0: memref<4x32xf32, #tpu.memory_space<vmem>>, %arg1: memref<88x128xf32, #tpu.memory_space<vmem>>, %arg2: memref<8x128xf32, #tpu.memory_space<vmem>>) attributes {dimension_semantics = [], scalar_prefetch = 0 : i64, scratch_operands = 0 : i64, tpu.core_type = #tpu.core_type<tc>} {
    %c0 = arith.constant 0 : index
    %c0_0 = arith.constant 0 : index
    %0 = vector.load %arg0[%c0, %c0_0] : memref<4x32xf32, #tpu.memory_space<vmem>>, vector<4x32xf32>
    %cst = arith.constant 0.000000e+00 : f32
    %1 = vector.broadcast %cst : f32 to vector<4x1xf32>
    %2 = vector.extract_strided_slice %0 {offsets = [0, 0], sizes = [4, 31], strides = [1, 1]} : vector<4x32xf32> to vector<4x31xf32>
    %3 = tpu.concatenate %1, %2 in 1 : vector<4x1xf32>, vector<4x31xf32> -> vector<4x32xf32>
    %c80 = arith.constant 80 : index
    %c0_1 = arith.constant 0 : index
    %4 = vector.load %arg1[%c80, %c0_1] : memref<88x128xf32, #tpu.memory_space<vmem>>, vector<1x32xf32>
    %5 = vector.broadcast %4 : vector<1x32xf32> to vector<4x32xf32>
    %6 = arith.mulf %3, %5 : vector<4x32xf32>
    %7 = vector.extract_strided_slice %0 {offsets = [0, 1], sizes = [4, 31], strides = [1, 1]} : vector<4x32xf32> to vector<4x31xf32>
    %cst_2 = arith.constant 0.000000e+00 : f32
    %8 = vector.broadcast %cst_2 : f32 to vector<4x1xf32>
    %9 = tpu.concatenate %7, %8 in 1 : vector<4x31xf32>, vector<4x1xf32> -> vector<4x32xf32>
    %c82 = arith.constant 82 : index
    %c0_3 = arith.constant 0 : index
    %10 = vector.load %arg1[%c82, %c0_3] : memref<88x128xf32, #tpu.memory_space<vmem>>, vector<1x32xf32>
    %11 = vector.broadcast %10 : vector<1x32xf32> to vector<4x32xf32>
    %12 = arith.mulf %9, %11 : vector<4x32xf32>
    %cst_4 = arith.constant 1.000000e+00 : f32
    %13 = vector.broadcast %cst_4 : f32 to vector<1x32xf32>
    %14 = tpu.concatenate %6, %0, %12, %13 in 0 : vector<4x32xf32>, vector<4x32xf32>, vector<4x32xf32>, vector<1x32xf32> -> vector<13x32xf32>
    %c0_5 = arith.constant 0 : index
    %c0_6 = arith.constant 0 : index
    %15 = vector.load %arg1[%c0_5, %c0_6] : memref<88x128xf32, #tpu.memory_space<vmem>>, vector<32x13xf32>
    %cst_7 = arith.constant dense<0.000000e+00> : vector<32x32xf32>
    %16 = tpu.matmul %15, %14, %cst_7 {dimension_numbers = #tpu.dot_dimension_numbers<[1], [0], [0], [1], [0, 0, 1, 1], [], []>} : vector<32x13xf32>, vector<13x32xf32>, vector<32x32xf32> -> vector<32x32xf32>
    %cst_8 = arith.constant 0.000000e+00 : f32
    %17 = vector.broadcast %cst_8 : f32 to vector<32x32xf32>
    %18 = arith.maximumf %16, %17 : vector<32x32xf32>
    %cst_9 = arith.constant 1.000000e+00 : f32
    %19 = vector.broadcast %cst_9 : f32 to vector<1x32xf32>
    %20 = tpu.concatenate %18, %19 in 0 : vector<32x32xf32>, vector<1x32xf32> -> vector<33x32xf32>
    %c72 = arith.constant 72 : index
    %c0_10 = arith.constant 0 : index
    %21 = vector.load %arg1[%c72, %c0_10] : memref<88x128xf32, #tpu.memory_space<vmem>>, vector<8x32xf32>
    %cst_11 = arith.constant dense<0.000000e+00> : vector<8x33xf32>
    %22 = tpu.matmul %21, %20, %cst_11 {dimension_numbers = #tpu.dot_dimension_numbers<[1], [1], [0], [0], [0, 0, 1, 0], [], []>} : vector<8x32xf32>, vector<33x32xf32>, vector<8x33xf32> -> vector<8x33xf32>
    %c32 = arith.constant 32 : index
    %c0_12 = arith.constant 0 : index
    %23 = vector.load %arg1[%c32, %c0_12] : memref<88x128xf32, #tpu.memory_space<vmem>>, vector<33x128xf32>
    %cst_13 = arith.constant dense<0.000000e+00> : vector<8x128xf32>
    %24 = tpu.matmul %22, %23, %cst_13 {dimension_numbers = #tpu.dot_dimension_numbers<[1], [0], [0], [1], [0, 0, 1, 1], [], []>} : vector<8x33xf32>, vector<33x128xf32>, vector<8x128xf32> -> vector<8x128xf32>
    %c0_14 = arith.constant 0 : index
    %c0_15 = arith.constant 0 : index
    %25 = vector.load %arg2[%c0_14, %c0_15] : memref<8x128xf32, #tpu.memory_space<vmem>>, vector<8x128xf32>
    tpu.vector_store %arg2[%c0_14, %c0_15], %24 {strides = array<i32>} : memref<8x128xf32, #tpu.memory_space<vmem>>, vector<8x128xf32>,
    return
  }
}

</mosaic_0001>

<bundles_post_ra>
// kernel: pretrained_keras_model_forward.1
= control target key start
LH: loop header
LB: loop body
LE: loop exit
PB: predicated region body
PF: predicated region fallthrough
CT: control target
= control target key end

     0   :  { %7 = vsyncpa [#allocation3], 0  ;;  %s232_s12 = smov [#allocation2]   ;;  %s233_s14 = smov 128   ;;  %s268_s0 = inlined_call_operand.vmem [shape: f32[4,32], index: 0, kind: input, shape index: {}]   ;;  %s269_s1 = inlined_call_operand.hbm [shape: f32[88,128], index: 1, kind: input, shape index: {}]   ;;  %s270_s2 = inlined_call_operand.vmem [shape: f32[8,128], index: 2, kind: output, shape index: {}]  }
   0x1   :  { %s14_s11 = sshll.u32 %s269_s1, 4  ;;  %s16_s13 = sshll.u32 %s232_s12, 4  ;;  %s15_s11 = int_to_ptr.hbm [resolvable:$true] %s14_s11  ;;  %s17_s13 = int_to_ptr.vmem [resolvable:$true] %s16_s13 }
   0x2   :  { %s234_s15 = smov 8  }
   0x3   :  { %22 = dma.hbm_to_vmem [thread:$0]  %s15_s11, 1408, %s17_s13, [#allocation3], %s233_s14, %s233_s14, %s234_s15  }
   0x4   :  { %230 = dma.done.wait [#allocation3], 1408  }
   0x5   :  { %231 = vsyncadd [#allocation3], 4294965888  ;;  %v27_v0 = vld [vmem:[%s268_s0] sm:$0xf]  ;;  %s235_s18 = smov 127   ;;  %s236_s19 = smov 1  }
   0x6   :  { %37 = vrot.lane.b32.xlu0 %v27_v0, %s235_s18  ;;  %vm40_vm0 = vcmask 252928   ;;  %v204_v1 = vld [vmem:[#allocation2 + $0x52] ss:$0 sm:$0xff]  ;;  %vm47_vm1 = vcmask 1043456   ;;  %vm67_vm2 = vcmask 1044480   ;;  %vm32_vm3 = vcmask 7168  }
   0x7   :  { %v205_v6 = vld [vmem:[#allocation2 + $0x50] ss:$0 sm:$0xff]  ;;  %v45_v7 = vrot.slane %v27_v0, 4  ;;  %v51_v11 = vld [vmem:[#allocation2 + $0x8] sm:$0xff]  ;;  %vm54_vm4 = vcmask 105472   ;;  %v50_v12 = vld [vmem:[#allocation2] sm:$0xff] }
   0x8   :  { %v52_v14 = vld [vmem:[#allocation2 + $0x10] sm:$0xff]  ;;  %v53_v15 = vld [vmem:[#allocation2 + $0x18] sm:$0xff]  ;;  %vm105_vm5 = vcmask 261120   ;;  %v237_v16 = vmov 1.0   ;;  %v148_v18 = vld [vmem:[#allocation2 + $0x40] sm:$0x1] }
   0x9   :  { %188 = vmatpush.xpose.msk.msra.mxu1 %vm105_vm5, %v237_v16  ;;  %vm153_vm6 = vcmask 1040384   ;;  %v147_v19 = vld [vmem:[#allocation2 + $0x38] sm:$0xff]  ;;  %v146_v20 = vld [vmem:[#allocation2 + $0x30] sm:$0xff]  ;;  %v145_v21 = vld [vmem:[#allocation2 + $0x28] sm:$0xff]  ;;  %vm149_vm7 = vcmask 269312  }
   0xa   :  { %194 = vmatpush.msk.msra.mxu2 %vm153_vm6, %v148_v18  ;;  %v104_v29 = vld [vmem:[#allocation2 + $0x48] sm:$0xff]  ;;  %v144_v30 = vld [vmem:[#allocation2 + $0x20] sm:$0xff] }
   0xc   :  { %169 = vmatpush.msra.mxu2 %v147_v19 }
   0xe   :  { %29 = vrot.lane.b32.xlu0 %v27_v0, %s236_s19  ;;  %170 = vmatpush.msra.mxu2 %v146_v20 }
  0x10   :  { %171 = vmatpush.msra.mxu2 %v145_v21 }
  0x12   :  { %172 = vmatpush.msra.mxu2 %v144_v30 }
  0x78   :  { %v38_v2 = vpop.permute.xlu0 %37 }
  0x79   :  { %v41_v3 = vsel %vm40_vm0, %v38_v2, 0.0 }
  0x7a   :  { %v44_v4 = vmul.f32 %v204_v1, %v41_v3 }
  0x7c   :  { %v49_v5 = vsel %vm47_vm1, %v44_v4, 1.0 }
  0x7d   :  { %183 = vmatpush.msk.msra.mxu0 %vm67_vm2, %v49_v5  ;;  %196 = vmatpush.msk.msra.mxu3 %vm67_vm2, %v49_v5 }
  0x80   :  { %v30_v8 = vpop.permute.xlu0 %29 }
  0x81   :  { %v33_v9 = vsel %vm32_vm3, 0.0, %v30_v8 }
  0x82   :  { %v36_v10 = vmul.f32 %v205_v6, %v33_v9 }
  0x84   :  { %v48_v13 = vsel %vm47_vm1, %v36_v10, %v45_v7 }
  0x85   :  { %86 = vmatpush.msra.mxu0 %v48_v13  ;;  %197 = vmatpush.msra.mxu3 %v48_v13 }
  0x86   :  { %185 = vmatmul.msk.f32.vlgmr.msra.gmra.mxu3 %vm54_vm4, %v51_v11  ;;  %184 = vmatmul.msk.f32.vlgmr.msra.gmra.mxu0 %vm54_vm4, %v50_v12 }
  0x8e   :  { %186 = vmatmul.msk.f32.gmra.mxu3 %vm54_vm4, %v52_v14 }
  0x96   :  { %187 = vmatmul.msk.f32.gmra.mxu3 %vm54_vm4, %v53_v15 }
 0x103   :  { %v88_v26 = vpop.f32.mrf.mxu0 }
 0x104   :  { %v100_v28 = vmax.f32 %v88_v26, 0.0 }
 0x109   :  { %v91_v17 = vpop.f32.mrf.mxu3 }
 0x10a   :  { %v101_v27 = vmax.f32 %v91_v17, 0.0 }
 0x111   :  { %v94_v22 = vpop.f32.mrf.mxu3 }
 0x112   :  { %v102_v25 = vmax.f32 %v94_v22, 0.0 }
 0x119   :  { %v97_v23 = vpop.f32.mrf.mxu3 }
 0x11a   :  { %v103_v24 = vmax.f32 %v97_v23, 0.0 }
 0x11c   :  { %189 = vmatpush.xpose.msk.msra.mxu1 %vm105_vm5, %v103_v24 }
 0x120   :  { %190 = vmatpush.xpose.msk.msra.mxu1 %vm105_vm5, %v102_v25 }
 0x124   :  { %191 = vmatpush.xpose.msk.msra.mxu1 %vm105_vm5, %v101_v27 }
 0x128   :  { %192 = vmatpush.xpose.msk.msra.mxu1 %vm105_vm5, %v100_v28 }
 0x12b   :  { %193 = vmatmul.msk.f32.vlgmr.msra.gmra.mxu1 %vm105_vm5, %v104_v29 }
 0x1a8   :  { %v141_v31 = vpop.f32.mrf.mxu1 }
 0x1a9   :  { %195 = vmatmul.msk.f32.vlgmr.msra.gmra.mxu2 %vm149_vm7, %v141_v31 }
 0x22c   :  { %v174_v32 = vpop.f32.mrf.mxu2 }
 0x22d   :  { %177 = vst [vmem:[%s270_s2] sm:$0xff] %v174_v32 }
 0x22e   :  { %182 = vsyncpa [#allocation3], 1 }

</bundles_post_ra>
